<compile_context>
chip_gen: v5e
topology: v5e:2x2
jax: 0.10.0
libtpu: 0.0.40
codegen_flags: <defaults>
</compile_context>

<pallas_src>
import functools

import jax
import jax.numpy as jnp
from jax import lax
from jax.experimental import pallas as pl
from jax.experimental.pallas import tpu as pltpu

EPS = 1e-12          # matches torch.nn.functional.normalize default eps
_MIB = 1024 * 1024


def _round_up(a, b):
    return -(-a // b) * b


def _chip_config():
    """Return (num_cores, vmem_limit_bytes, vmem_budget_bytes) for this chip."""
    try:
        kind = jax.devices()[0].device_kind.lower()
    except Exception:
        kind = ""
    if "v7" in kind or "7x" in kind:
        # v7x: 2 TensorCores/chip, only 64 MiB VMEM per core -> split + tight cap.
        return 2, 48 * _MIB, 36 * _MIB
    if "v5e" in kind or "v6" in kind or "lite" in kind:
        # v5e / v6e: single TensorCore, 128 MiB VMEM -> no core split, bigger tiles.
        return 1, 80 * _MIB, 64 * _MIB
    # v2/v3/v4/v5p megacore or unknown: 2-way split, conservative VMEM.
    return 2, 48 * _MIB, 36 * _MIB


def _nn_argmax_kernel(x_ref, bank_ref, invn_ref, bias_ref, val_ref, idx_ref):
    """Grid = (core, q_tile, bank_tile). Running (max, argmax) per query per core.

    x_ref:    (tile_n, D_pad)  pre-L2-normalized queries (bf16)
    bank_ref: (D_pad, tile_m)  raw bank tile, entries lane-dense (bf16)
    invn_ref: (1, tile_m)      precomputed 1/||bank column||  (f32; 0 on padding)
    bias_ref: (1, tile_m)      0 for real columns, -inf for padded columns (f32)
    val_ref:  (tile_n, 1)      running max similarity  (output, resident over tiles)
    idx_ref:  (tile_n, 1)      running argmax (global bank column index)
    """
    c = pl.program_id(0)
    t = pl.program_id(2)
    tm = bank_ref.shape[1]

    @pl.when(t == 0)
    def _init():
        val_ref[...] = jnp.full_like(val_ref, -jnp.inf)
        idx_ref[...] = jnp.zeros_like(idx_ref)

    # Cosine-similarity tile: bf16 operands straight to the MXU, f32 accumulate.
    dot = jnp.dot(x_ref[...], bank_ref[...],
                  preferred_element_type=jnp.float32)           # (tile_n, tile_m)
    # Scale by precomputed inverse column norm and add padding bias (-inf on pads).
    sim = dot * invn_ref[...] + bias_ref[...]                   # (tile_n, tile_m)

    # In-tile max + first-occurrence argmax (global column index).
    tile_max = jnp.max(sim, axis=-1, keepdims=True)             # (tile_n, 1)
    local_cols = lax.broadcasted_iota(jnp.int32, (1, tm), 1)    # (1, tile_m)
    sentinel = jnp.int32(2**31 - 1)
    local_arg = jnp.min(jnp.where(sim == tile_max, local_cols, sentinel),
                        axis=-1, keepdims=True)                 # (tile_n, 1)
    col0 = (c * pl.num_programs(2) + t) * tm
    tile_arg = local_arg + col0

    # Strict '>' keeps the earliest index across tiles (first-occurrence argmax).
    better = tile_max > val_ref[...]
    idx_ref[...] = jnp.where(better, tile_arg, idx_ref[...])
    val_ref[...] = jnp.where(better, tile_max, val_ref[...])


@functools.partial(
    jax.jit,
    static_argnames=("num_cores", "vmem_limit_bytes", "vmem_budget_bytes",
                     "bank_dtype"))
def _nn_forward(x, bank, *, num_cores, vmem_limit_bytes, vmem_budget_bytes,
                bank_dtype):
    n, d = x.shape
    d2, s = bank.shape
    if d != d2:
        raise ValueError(f"dim mismatch: x {x.shape} vs bank {bank.shape}")

    # ---- query normalization hoisted out of the kernel (done once) ----
    xf = x.astype(jnp.float32)
    x_n = xf / jnp.maximum(jnp.sqrt(jnp.sum(xf * xf, axis=-1, keepdims=True)), EPS)

    # ---- bank column inverse norms precomputed once (f32, natural layout) ----
    bf = bank.astype(jnp.float32)
    inv_norm = lax.rsqrt(
        jnp.maximum(jnp.sum(bf * bf, axis=0, keepdims=True), EPS * EPS))  # (1, S)

    itemsize = jnp.dtype(bank_dtype).itemsize
    d_pad = _round_up(d, 16 if itemsize == 2 else 8)

    # ---- query tiling (bounds the (tile_n, tile_m) sim intermediate) ----
    tile_n = min(256, _round_up(n, 16))
    n_pad = _round_up(n, tile_n)
    q_tiles = n_pad // tile_n

    # ---- bank tiling: byte-targeted (~4 MiB of bank per tile), VMEM-budgeted ----
    tile_m = max(256, (4 * _MIB) // (d_pad * itemsize) // 256 * 256)
    tile_m = min(tile_m, _round_up(s, 128))
    tile_m = _round_up(tile_m, 128)

    def _vmem_bytes(tm):
        bank_bufs = 2 * d_pad * tm * itemsize        # double-buffered bank tile
        scale_bufs = 2 * 2 * tm * 4                  # inv-norm + bias streams
        x_bufs = 2 * tile_n * d_pad * itemsize
        sim_tmps = 3 * tile_n * tm * 4               # sim + compare/select temps
        out_bufs = 4 * tile_n * 8
        return bank_bufs + scale_bufs + x_bufs + sim_tmps + out_bufs

    while tile_m > 256 and _vmem_bytes(tile_m) > vmem_budget_bytes:
        tile_m = _round_up(tile_m // 2, 128)

    tiles_total = -(-s // tile_m)
    t_per_core = -(-tiles_total // num_cores)
    s_pad = num_cores * t_per_core * tile_m

    # ---- padded / cast operands ----
    x_p = jnp.pad(x_n, ((0, n_pad - n), (0, d_pad - d))).astype(bank_dtype)
    bank_p = jnp.pad(bank, ((0, d_pad - d), (0, s_pad - s))).astype(bank_dtype)
    invn_p = jnp.pad(inv_norm, ((0, 0), (0, s_pad - s)))                  # 0 on pads
    cols = jnp.arange(s_pad, dtype=jnp.int32)[None, :]
    bias_p = jnp.where(cols < s, 0.0, -jnp.inf).astype(jnp.float32)       # (1, S_pad)

    best_val, best_idx = pl.pallas_call(
        _nn_argmax_kernel,
        out_shape=(
            jax.ShapeDtypeStruct((num_cores, n_pad, 1), jnp.float32),
            jax.ShapeDtypeStruct((num_cores, n_pad, 1), jnp.int32),
        ),
        grid_spec=pltpu.PrefetchScalarGridSpec(
            num_scalar_prefetch=0,
            grid=(num_cores, q_tiles, t_per_core),
            in_specs=[
                # queries: one tile per q index, resident across the bank scan
                pl.BlockSpec((tile_n, d_pad), lambda c, q, t: (q, 0)),
                # bank tile: (D_pad, tile_m), entries lane-dense
                pl.BlockSpec((d_pad, tile_m),
                             lambda c, q, t: (0, c * t_per_core + t)),
                # precomputed inverse column norms / padding bias
                pl.BlockSpec((1, tile_m), lambda c, q, t: (0, c * t_per_core + t)),
                pl.BlockSpec((1, tile_m), lambda c, q, t: (0, c * t_per_core + t)),
            ],
            out_specs=(
                pl.BlockSpec((None, tile_n, 1), lambda c, q, t: (c, q, 0)),
                pl.BlockSpec((None, tile_n, 1), lambda c, q, t: (c, q, 0)),
            ),
        ),
        compiler_params=pltpu.CompilerParams(
            dimension_semantics=("parallel", "parallel", "arbitrary"),
            vmem_limit_bytes=vmem_limit_bytes,
        ),
    )(x_p, bank_p, invn_p, bias_p)

    # Merge the per-core partial (max, argmax); lower core index wins on ties,
    # preserving first-occurrence argmax semantics (cores own contiguous column
    # ranges in increasing order).
    vals = best_val[:, :n, 0]   # (C, N)
    idxs = best_idx[:, :n, 0]   # (C, N)
    best_v, best_i = vals[0], idxs[0]
    for c in range(1, num_cores):
        take = vals[c] > best_v
        best_i = jnp.where(take, idxs[c], best_i)
        best_v = jnp.where(take, vals[c], best_v)

    # index_select(bank.t(), dim=0, index=argmax)  ==  bank[:, argmax].T
    # TODO(synk): for very large N, gather rows from an (S, D)-layout copy instead
    # of a lane-axis gather + transpose on the (D, S) bank.
    return jnp.take(bank, best_i, axis=1).T, best_i


def nn_memory_bank_forward(x, bank, *, bank_dtype=jnp.bfloat16,
                           return_index=False):
    """Nearest-neighbour lookup: for each row of x return the closest bank entry.

    x:    (N, D) float queries
    bank: (D, S) memory bank in its natural torch layout (entries are columns)
    Returns (N, D) = index_select(bank.t(), 0, argmax cosine similarity).
    """
    num_cores, vmem_limit, vmem_budget = _chip_config()
    nn_rows, idx = _nn_forward(
        x, bank, num_cores=num_cores, vmem_limit_bytes=vmem_limit,
        vmem_budget_bytes=vmem_budget, bank_dtype=bank_dtype)
    return (nn_rows, idx) if return_index else nn_rows


def init_memory_bank(key, dim, size):
    """Mirrors MemoryBankModule._init_memory_bank: randn(dim, size), normalize dim=0.
    Stored in the natural (dim, size) layout."""
    bank = jax.random.normal(key, (dim, size), dtype=jnp.float32)
    return bank / jnp.maximum(
        jnp.sqrt(jnp.sum(bank * bank, axis=0, keepdims=True)), EPS)


# TODO(synk): the `update=True` dequeue/enqueue path mutates module state after the
# bank is cloned, so it never affects the forward output; not implemented here.


if __name__ == "__main__":
    key = jax.random.PRNGKey(0)
    k_bank, k_noise = jax.random.split(key)

    # Small shapes: SIZE not a multiple of the tile width -> ragged padding,
    # bias masking, multi-core padded-tile and cross-core merge paths all run.
    # DIM=24 exercises the D-padding (to 32) for the bf16 sublane tile.
    N, DIM, SIZE = 8, 24, 1000

    bank = init_memory_bank(k_bank, DIM, SIZE)                 # (DIM, SIZE)

    # Queries = noisy copies of known bank columns (clear nearest neighbours, so
    # the bf16 operand path cannot flip the argmax under a near-tie).
    planted = jnp.array([3, 50, 123, 400, 512, 777, 900, 999], dtype=jnp.int32)
    noise = 0.05 * jax.random.normal(k_noise, (N, DIM), dtype=jnp.float32)
    x = bank[:, planted].T + noise                             # (N, DIM)

    nn_out, nn_idx = nn_memory_bank_forward(x, bank, return_index=True)
    nn_out = jax.block_until_ready(nn_out)

    # Pure-JAX reference (mirrors the torch forward: normalize, einsum, argmax,
    # index_select), computed in f32.
    x_n = x / jnp.maximum(jnp.linalg.norm(x, axis=1, keepdims=True), EPS)
    bank_t = bank.T                                            # (SIZE, DIM)
    b_n = bank_t / jnp.maximum(jnp.linalg.norm(bank_t, axis=1, keepdims=True), EPS)
    sim = x_n @ b_n.T
    ref_idx = jnp.argmax(sim, axis=1)
    ref = bank_t[ref_idx]

    assert nn_out.shape == (N, DIM)
    assert jnp.array_equal(nn_idx.astype(jnp.int32), ref_idx.astype(jnp.int32)), (
        nn_idx, ref_idx)
    assert jnp.allclose(nn_out, ref, atol=1e-5), "mismatch vs reference"

    print("KERNEL_OK")
</pallas_src>

<mosaic_0001>
module attributes {stable_mosaic.version = 11 : i64} {
  func.func @_nn_argmax_kernel(%arg0: i32, %arg1: i32, %arg2: i32, %arg3: memref<16x32xbf16, #tpu.memory_space<vmem>>, %arg4: memref<32x1024xbf16, #tpu.memory_space<vmem>>, %arg5: memref<1x1024xf32, #tpu.memory_space<vmem>>, %arg6: memref<1x1024xf32, #tpu.memory_space<vmem>>, %arg7: memref<1x16x1xf32, #tpu.memory_space<vmem>>, %arg8: memref<1x16x1xi32, #tpu.memory_space<vmem>>) attributes {dimension_semantics = [#tpu.dimension_semantics<parallel>, #tpu.dimension_semantics<parallel>, #tpu.dimension_semantics<arbitrary>], iteration_bounds = array<i64: 2, 1, 1>, scalar_prefetch = 0 : i64, scratch_operands = 0 : i64, tpu.core_type = #tpu.core_type<tc>, window_params = [{transform_indices = @transform_0, window_bounds = array<i64: 16, 32>}, {transform_indices = @transform_1, window_bounds = array<i64: 32, 1024>}, {transform_indices = @transform_2, window_bounds = array<i64: 1, 1024>}, {transform_indices = @transform_3, window_bounds = array<i64: 1, 1024>}, {transform_indices = @transform_4, window_bounds = array<i64: 1, 16, 1>}, {transform_indices = @transform_5, window_bounds = array<i64: 1, 16, 1>}]} {
    %c0_i32 = arith.constant 0 : i32
    %0 = arith.cmpi eq, %arg2, %c0_i32 : i32
    %1 = arith.extui %0 : i1 to i32
    %c0_i32_0 = arith.constant 0 : i32
    %2 = arith.cmpi ne, %1, %c0_i32_0 : i32
    scf.if %2 {
      %cst_25 = arith.constant 0xFF800000 : f32
      %43 = vector.broadcast %cst_25 : f32 to vector<16x1xf32>
      %c0_26 = arith.constant 0 : index
      %c0_27 = arith.constant 0 : index
      %c0_28 = arith.constant 0 : index
      %44 = vector.load %arg7[%c0_26, %c0_27, %c0_28] : memref<1x16x1xf32, #tpu.memory_space<vmem>>, vector<1x16x1xf32>
      %45 = vector.shape_cast %44 : vector<1x16x1xf32> to vector<16x1xf32>
      %46 = vector.shape_cast %43 : vector<16x1xf32> to vector<1x16x1xf32>
      tpu.vector_store %arg7[%c0_26, %c0_27, %c0_28], %46 {strides = array<i32>} : memref<1x16x1xf32, #tpu.memory_space<vmem>>, vector<1x16x1xf32>,
      %c0_i32_29 = arith.constant 0 : i32
      %47 = vector.broadcast %c0_i32_29 : i32 to vector<16x1xi32>
      %c0_30 = arith.constant 0 : index
      %c0_31 = arith.constant 0 : index
      %c0_32 = arith.constant 0 : index
      %48 = vector.load %arg8[%c0_30, %c0_31, %c0_32] : memref<1x16x1xi32, #tpu.memory_space<vmem>>, vector<1x16x1xi32>
      %49 = vector.shape_cast %48 : vector<1x16x1xi32> to vector<16x1xi32>
      %50 = vector.shape_cast %47 : vector<16x1xi32> to vector<1x16x1xi32>
      tpu.vector_store %arg8[%c0_30, %c0_31, %c0_32], %50 {strides = array<i32>} : memref<1x16x1xi32, #tpu.memory_space<vmem>>, vector<1x16x1xi32>,
    } else {
    }
    %c0 = arith.constant 0 : index
    %c0_1 = arith.constant 0 : index
    %3 = vector.load %arg3[%c0, %c0_1] : memref<16x32xbf16, #tpu.memory_space<vmem>>, vector<16x32xbf16>
    %c0_2 = arith.constant 0 : index
    %c0_3 = arith.constant 0 : index
    %4 = vector.load %arg4[%c0_2, %c0_3] : memref<32x1024xbf16, #tpu.memory_space<vmem>>, vector<32x1024xbf16>
    %cst = arith.constant dense<0.000000e+00> : vector<16x1024xf32>
    %5 = tpu.matmul %3, %4, %cst {dimension_numbers = #tpu.dot_dimension_numbers<[1], [0], [0], [1], [0, 0, 1, 1], [], []>} : vector<16x32xbf16>, vector<32x1024xbf16>, vector<16x1024xf32> -> vector<16x1024xf32>
    %c0_4 = arith.constant 0 : index
    %c0_5 = arith.constant 0 : index
    %6 = vector.load %arg5[%c0_4, %c0_5] : memref<1x1024xf32, #tpu.memory_space<vmem>>, vector<1x1024xf32>
    %7 = vector.broadcast %6 : vector<1x1024xf32> to vector<16x1024xf32>
    %8 = arith.mulf %5, %7 : vector<16x1024xf32>
    %c0_6 = arith.constant 0 : index
    %c0_7 = arith.constant 0 : index
    %9 = vector.load %arg6[%c0_6, %c0_7] : memref<1x1024xf32, #tpu.memory_space<vmem>>, vector<1x1024xf32>
    %10 = vector.broadcast %9 : vector<1x1024xf32> to vector<16x1024xf32>
    %11 = arith.addf %8, %10 : vector<16x1024xf32>
    %cst_8 = arith.constant dense<0xFF800000> : vector<16xf32>
    %12 = vector.multi_reduction <maximumf>, %11, %cst_8 [1] : vector<16x1024xf32> to vector<16xf32>
    %13 = vector.shape_cast %12 : vector<16xf32> to vector<16x1xf32>
    %14 = tpu.iota {dimensions = array<i32: 1>} : vector<1x1024xi32>
    %15 = vector.broadcast %13 : vector<16x1xf32> to vector<16x1024xf32>
    %16 = arith.cmpf oeq, %11, %15 : vector<16x1024xf32>
    %c2147483647_i32 = arith.constant 2147483647 : i32
    %17 = vector.shape_cast %14 : vector<1x1024xi32> to vector<1x1024xi32>
    %18 = vector.broadcast %17 : vector<1x1024xi32> to vector<16x1024xi32>
    %19 = vector.broadcast %c2147483647_i32 : i32 to vector<16x1024xi32>
    %20 = arith.select %16, %18, %19 : vector<16x1024xi1>, vector<16x1024xi32>
    %cst_9 = arith.constant dense<2147483647> : vector<16xi32>
    %21 = vector.multi_reduction <minsi>, %20, %cst_9 [1] : vector<16x1024xi32> to vector<16xi32>
    %22 = vector.shape_cast %21 : vector<16xi32> to vector<16x1xi32>
    %c1_i32 = arith.constant 1 : i32
    %23 = arith.muli %arg0, %c1_i32 : i32
    %24 = arith.addi %23, %arg2 : i32
    %c1024_i32 = arith.constant 1024 : i32
    %25 = arith.muli %24, %c1024_i32 : i32
    %26 = vector.broadcast %25 : i32 to vector<16x1xi32>
    %27 = arith.addi %22, %26 : vector<16x1xi32>
    %c0_10 = arith.constant 0 : index
    %c0_11 = arith.constant 0 : index
    %c0_12 = arith.constant 0 : index
    %28 = vector.load %arg7[%c0_10, %c0_11, %c0_12] : memref<1x16x1xf32, #tpu.memory_space<vmem>>, vector<1x16x1xf32>
    %29 = vector.shape_cast %28 : vector<1x16x1xf32> to vector<16x1xf32>
    %30 = arith.cmpf ogt, %13, %29 : vector<16x1xf32>
    %c0_13 = arith.constant 0 : index
    %c0_14 = arith.constant 0 : index
    %c0_15 = arith.constant 0 : index
    %31 = vector.load %arg8[%c0_13, %c0_14, %c0_15] : memref<1x16x1xi32, #tpu.memory_space<vmem>>, vector<1x16x1xi32>
    %32 = vector.shape_cast %31 : vector<1x16x1xi32> to vector<16x1xi32>
    %33 = arith.select %30, %27, %32 : vector<16x1xi1>, vector<16x1xi32>
    %c0_16 = arith.constant 0 : index
    %c0_17 = arith.constant 0 : index
    %c0_18 = arith.constant 0 : index
    %34 = vector.load %arg8[%c0_16, %c0_17, %c0_18] : memref<1x16x1xi32, #tpu.memory_space<vmem>>, vector<1x16x1xi32>
    %35 = vector.shape_cast %34 : vector<1x16x1xi32> to vector<16x1xi32>
    %36 = vector.shape_cast %33 : vector<16x1xi32> to vector<1x16x1xi32>
    tpu.vector_store %arg8[%c0_16, %c0_17, %c0_18], %36 {strides = array<i32>} : memref<1x16x1xi32, #tpu.memory_space<vmem>>, vector<1x16x1xi32>,
    %c0_19 = arith.constant 0 : index
    %c0_20 = arith.constant 0 : index
    %c0_21 = arith.constant 0 : index
    %37 = vector.load %arg7[%c0_19, %c0_20, %c0_21] : memref<1x16x1xf32, #tpu.memory_space<vmem>>, vector<1x16x1xf32>
    %38 = vector.shape_cast %37 : vector<1x16x1xf32> to vector<16x1xf32>
    %39 = arith.select %30, %13, %38 : vector<16x1xi1>, vector<16x1xf32>
    %c0_22 = arith.constant 0 : index
    %c0_23 = arith.constant 0 : index
    %c0_24 = arith.constant 0 : index
    %40 = vector.load %arg7[%c0_22, %c0_23, %c0_24] : memref<1x16x1xf32, #tpu.memory_space<vmem>>, vector<1x16x1xf32>
    %41 = vector.shape_cast %40 : vector<1x16x1xf32> to vector<16x1xf32>
    %42 = vector.shape_cast %39 : vector<16x1xf32> to vector<1x16x1xf32>
    tpu.vector_store %arg7[%c0_22, %c0_23, %c0_24], %42 {strides = array<i32>} : memref<1x16x1xf32, #tpu.memory_space<vmem>>, vector<1x16x1xf32>,
    return
  }
  func.func @transform_0(%arg0: i32, %arg1: i32, %arg2: i32) -> (i32, i32) {
    %c0_i32 = arith.constant 0 : i32
    %c0_i32_0 = arith.constant 0 : i32
    return %arg1, %c0_i32 : i32, i32
  }
  func.func @transform_1(%arg0: i32, %arg1: i32, %arg2: i32) -> (i32, i32) {
    %c1_i32 = arith.constant 1 : i32
    %0 = arith.muli %arg0, %c1_i32 : i32
    %1 = arith.addi %0, %arg2 : i32
    %c0_i32 = arith.constant 0 : i32
    %c0_i32_0 = arith.constant 0 : i32
    return %c0_i32, %1 : i32, i32
  }
  func.func @transform_2(%arg0: i32, %arg1: i32, %arg2: i32) -> (i32, i32) {
    %c1_i32 = arith.constant 1 : i32
    %0 = arith.muli %arg0, %c1_i32 : i32
    %1 = arith.addi %0, %arg2 : i32
    %c0_i32 = arith.constant 0 : i32
    %c0_i32_0 = arith.constant 0 : i32
    return %c0_i32, %1 : i32, i32
  }
  func.func @transform_3(%arg0: i32, %arg1: i32, %arg2: i32) -> (i32, i32) {
    %c1_i32 = arith.constant 1 : i32
    %0 = arith.muli %arg0, %c1_i32 : i32
    %1 = arith.addi %0, %arg2 : i32
    %c0_i32 = arith.constant 0 : i32
    %c0_i32_0 = arith.constant 0 : i32
    return %c0_i32, %1 : i32, i32
  }
  func.func @transform_4(%arg0: i32, %arg1: i32, %arg2: i32) -> (i32, i32, i32) {
    %c0_i32 = arith.constant 0 : i32
    %c0_i32_0 = arith.constant 0 : i32
    return %arg0, %arg1, %c0_i32 : i32, i32, i32
  }
  func.func @transform_5(%arg0: i32, %arg1: i32, %arg2: i32) -> (i32, i32, i32) {
    %c0_i32 = arith.constant 0 : i32
    %c0_i32_0 = arith.constant 0 : i32
    return %arg0, %arg1, %c0_i32 : i32, i32, i32
  }
}

</mosaic_0001>

<bundles_post_ra>
// kernel: _nn_forward.1
= control target key start
LH: loop header
LB: loop body
LE: loop exit
PB: predicated region body
PF: predicated region fallthrough
CT: control target
= control target key end

     0   :  { %s1245_s18 = smov 0   ;;  %s1247_s19 = smov 0   ;;  %s1544_s0 = inlined_call_operand.vmem [shape: bf16[16,32], index: 0, kind: input, shape index: {}]   ;;  %s1545_s1 = inlined_call_operand.vmem [shape: bf16[32,2048], index: 1, kind: input, shape index: {}]   ;;  %s1546_s2 = inlined_call_operand.vmem [shape: f32[1,2048], index: 2, kind: input, shape index: {}]   ;;  %s1547_s3 = inlined_call_operand.vmem [shape: f32[1,2048], index: 3, kind: input, shape index: {}]   ;;  %s1548_s4 = inlined_call_operand.vmem [shape: f32[2,16,1], index: 4, kind: output, shape index: {0}]   ;;  %s1549_s5 = inlined_call_operand.vmem [shape: s32[2,16,1], index: 5, kind: output, shape index: {1}]  }
   0x1   :  { %s1249_s20 = smov 0   ;;  %s1251_s21 = smov 0  }
   0x2   :  { %s1253_s22 = smov 0  }
   0x3 LB: > { %s35_s23 = sadd.s32 1, %s1207_s21  ;;  %p77_p1 = scmp.ne.s32.totalorder %s1199_s19, %s1195_s18  ;;  %s1211_s22 = sphi %s1253_s22, %s16_s22   ;;  %s1207_s21 = sphi %s1251_s21, %s1553_s21   ;;  %s1203_s20 = sphi %s1249_s20, %s1552_s20   ;;  %s1199_s19 = sphi %s1247_s19, %s1551_s19   ;;  %s1195_s18 = sphi %s1245_s18, %s1550_s18  }
   0x4   : > { %p37_p0 = scmp.ge.s32.totalorder %s35_s23, 2  ;;  %p78_p2 = scmp.eq.s32.totalorder %s1211_s22, 0 }
   0x5   : > { %s70_s25 = sadd.s32 1, %s1199_s19  ;;  %p1020_p5 = scmp.ge.s32.totalorder %s1211_s22, 2 }
   0x6   : > { %s1555_s23 = smov (%p37_p0, %s35_s23), 0  ;;  %p79_p3 = por %p78_p2, %p77_p1 }
   0x7   : > { %s67_s24 = ssub.s32 %s1207_s21, %s1555_s23  ;;  %224 = sbr.rel (%p1020_p5) target bundleno = 32 (0x20), region = 20 }
   0x8   : > { %p68_p4 = scmp.eq.s32.totalorder %s67_s24, 0 }
   0xa   : > { %s1280_s26 = scalar_select %p68_p4, %s1199_s19, %s70_s25  }
   0xc   : > { %227 = sbr.rel (!%p79_p3) target bundleno = 32 (0x20), region = 24  ;;  %s229_s27 = sand.u32 (%p79_p3), 1, %s1199_s19  }
   0xd   : > { %s1111_s28 = sshll.u32 (%p79_p3), %s1207_s21, 5  ;;  %s1021_s29 = sshll.u32 (%p79_p3), %s229_s27, 7 }
   0xe   : > { %s1288_s7 = scalar_lea.vmem (%p79_p3), %s1545_s1, %s1111_s28  ;;  %s231_s8 = scalar_lea.vmem (%p79_p3), [#allocation2], %s1021_s29 }
   0xf   : > { %v248_v0 = vld [vmem:[%s1288_s7] sm:$0xff] (%p79_p3)  ;;  %v250_v1 = vld [vmem:[%s1288_s7 + $0x8] sm:$0xff] (%p79_p3)  ;;  %v252_v2 = vld [vmem:[%s1288_s7 + $0x10] sm:$0xff] (%p79_p3) }
  0x10   : > { %249 = vst [vmem:[%s231_s8] sm:$0xff] (%p79_p3), %v248_v0  ;;  %v254_v3 = vld [vmem:[%s1288_s7 + $0x18] sm:$0xff] (%p79_p3)  ;;  %v256_v4 = vld [vmem:[%s1288_s7 + $0x40] sm:$0xff] (%p79_p3)  ;;  %v258_v5 = vld [vmem:[%s1288_s7 + $0x48] sm:$0xff] (%p79_p3) }
  0x11   : > { %251 = vst [vmem:[%s231_s8 + $0x8] sm:$0xff] %v250_v1  ;;  %v260_v6 = vld [vmem:[%s1288_s7 + $0x50] sm:$0xff]  ;;  %v262_v7 = vld [vmem:[%s1288_s7 + $0x58] sm:$0xff]  ;;  %v264_v8 = vld [vmem:[%s1288_s7 + $0x80] sm:$0xff] }
  0x12   : > { %253 = vst [vmem:[%s231_s8 + $0x10] sm:$0xff] %v252_v2  ;;  %v266_v9 = vld [vmem:[%s1288_s7 + $0x88] sm:$0xff]  ;;  %v268_v10 = vld [vmem:[%s1288_s7 + $0x90] sm:$0xff]  ;;  %v270_v11 = vld [vmem:[%s1288_s7 + $0x98] sm:$0xff] }
  0x13   : > { %255 = vst [vmem:[%s231_s8 + $0x18] sm:$0xff] %v254_v3  ;;  %v272_v12 = vld [vmem:[%s1288_s7 + $0xc0] sm:$0xff]  ;;  %v274_v13 = vld [vmem:[%s1288_s7 + $0xc8] sm:$0xff]  ;;  %v276_v14 = vld [vmem:[%s1288_s7 + $0xd0] sm:$0xff] }
  0x14   : > { %257 = vst [vmem:[%s231_s8 + $0x20] sm:$0xff] %v256_v4  ;;  %v278_v15 = vld [vmem:[%s1288_s7 + $0xd8] sm:$0xff] }
  0x15   : > { %259 = vst [vmem:[%s231_s8 + $0x28] sm:$0xff] %v258_v5 }
  0x16   : > { %261 = vst [vmem:[%s231_s8 + $0x30] sm:$0xff] %v260_v6 }
  0x17   : > { %263 = vst [vmem:[%s231_s8 + $0x38] sm:$0xff] %v262_v7 }
  0x18   : > { %265 = vst [vmem:[%s231_s8 + $0x40] sm:$0xff] %v264_v8 }
  0x19   : > { %267 = vst [vmem:[%s231_s8 + $0x48] sm:$0xff] %v266_v9 }
  0x1a   : > { %269 = vst [vmem:[%s231_s8 + $0x50] sm:$0xff] %v268_v10 }
  0x1b   : > { %271 = vst [vmem:[%s231_s8 + $0x58] sm:$0xff] %v270_v11 }
  0x1c   : > { %273 = vst [vmem:[%s231_s8 + $0x60] sm:$0xff] %v272_v12 }
  0x1d   : > { %275 = vst [vmem:[%s231_s8 + $0x68] sm:$0xff] %v274_v13 }
  0x1e   : > { %277 = vst [vmem:[%s231_s8 + $0x70] sm:$0xff] %v276_v14 }
  0x1f   : > { %279 = vst [vmem:[%s231_s8 + $0x78] sm:$0xff] %v278_v15 }
  0x20 PF: > { %p1024_p6 = scmp.ge.s32.totalorder %s1211_s22, 1  ;;  %p304_p7 = scmp.lt.s32.totalorder %s1211_s22, 3 }
  0x22   : > { %p305_p8 = pnand %p1024_p6, %p304_p7 }
  0x23   : > { %s311_s9 = sand.u32 (!%p305_p8), 1, %s1195_s18   ;;  %s1026_s14 = sshll.u32 (!%p305_p8), %s1203_s20, 3 }
  0x24   : > { %308 = sbr.rel (%p305_p8) target bundleno = 593 (0x251), region = 55  ;;  %s1025_s10 = sshll.u32 (!%p305_p8), %s311_s9, 7 }
  0x25   : > { %s1309_s11 = scalar_lea.vmem (!%p305_p8), [#allocation2], %s1025_s10  ;;  %p376_p9 = scmp.lt.s32.totalorder (!%p305_p8), %s1026_s14, 15 }
  0x26   : > { %p389_p10 = scmp.lt.s32.totalorder (!%p305_p8), %s1203_s20, 1  ;;  %s1108_s10 = sshll.u32 (!%p305_p8), %s1203_s20, 10 }
  0x29   : > { %vm521_vm0 = vcmask 261120   ;;  %v1070_v16 = vld [vmem:[%s1309_s11 + $0x40] sm:$0xf]  ;;  %v1123_v18 = vld [vmem:[%s1309_s11 + $0x44] sm:$0xf]  ;;  %s1557_s14 = smov (!%p376_p9, %s1026_s14), 15 }
  0x2a   : > { %v1127_v17 = vld [vmem:[%s1309_s11 + $0x5c] sm:$0xf0]  ;;  %v1072_v20 = vld [vmem:[%s1309_s11 + $0x60] sm:$0xf0]  ;;  %v1078_v21 = vld [vmem:[%s1309_s11 + $0x48] sm:$0xf]  ;;  %s378_s17 = scalar_lea.vmem %s1546_s2, %s1557_s14  ;;  %s385_s25 = scalar_lea.vmem %s1547_s3, %s1557_s14 }
  0x2b   : > { %v1071_v19 = vor.u32 %v1127_v17, %v1070_v16  ;;  %v1128_v22 = vld [vmem:[%s1309_s11 + $0x64] sm:$0xf0]  ;;  %v1075_v23 = vor.u32 %v1123_v18, %v1072_v20  ;;  %v1124_v25 = vld [vmem:[%s1309_s11 + $0x4c] sm:$0xf]  ;;  %v1038_v27 = vld [vmem:[%s1309_s11] sm:$0xf] }
  0x2c   : > { %v1079_v24 = vor.u32 %v1128_v22, %v1078_v21  ;;  %v1080_v26 = vld [vmem:[%s1309_s11 + $0x68] sm:$0xf0]  ;;  %v1119_v29 = vld [vmem:[%s1309_s11 + $0x1c] sm:$0xf0]  ;;  %v1115_v30 = vld [vmem:[%s1309_s11 + $0x4] sm:$0xf] }
  0x2d   : > { %531 = vmatpush.bf16.msra.mxu0 %v1071_v19  ;;  %v1083_v28 = vor.u32 %v1124_v25, %v1080_v26  ;;  %v1040_v31 = vld [vmem:[%s1309_s11 + $0x20] sm:$0xf0]  ;;  %545 = vmatpush.bf16.msra.mxu1 %v1075_v23  ;;  %v1039_v32 = vor.u32 %v1119_v29, %v1038_v27  ;;  %v1046_v34 = vld [vmem:[%s1309_s11 + $0x8] sm:$0xf]  ;;  %v1116_v36 = vld [vmem:[%s1309_s11 + $0xc] sm:$0xf] }
  0x2e   : > { %559 = vmatpush.bf16.msra.mxu2 %v1079_v24  ;;  %v1043_v33 = vor.u32 %v1115_v30, %v1040_v31  ;;  %v1120_v35 = vld [vmem:[%s1309_s11 + $0x24] sm:$0xf0]  ;;  %v1114_v37 = vld [vmem:[%s1544_s0] sm:$0xff]  ;;  %v1048_v39 = vld [vmem:[%s1309_s11 + $0x28] sm:$0xf0]  ;;  %s1431_s27 = scalar_select %p389_p10, %s1203_s20, 1 }
  0x2f   : > { %573 = vmatpush.bf16.msra.mxu3 %v1083_v28  ;;  %v1047_v38 = vor.u32 %v1120_v35, %v1046_v34  ;;  %v1094_v40 = vld [vmem:[%s1309_s11 + $0x58] sm:$0xf]  ;;  %v1051_v42 = vor.u32 %v1116_v36, %v1048_v39  ;;  %v1126_v44 = vld [vmem:[%s1309_s11 + $0x5c] sm:$0xf]  ;;  %v1086_v46 = vld [vmem:[%s1309_s11 + $0x50] sm:$0xf] }
  0x30   : > { %v1130_v41 = vld [vmem:[%s1309_s11 + $0x74] sm:$0xf0]  ;;  %v1096_v45 = vld [vmem:[%s1309_s11 + $0x78] sm:$0xf0]  ;;  %v1129_v48 = vld [vmem:[%s1309_s11 + $0x6c] sm:$0xf0] }
  0x31   : > { %v1095_v43 = vor.u32 %v1130_v41, %v1094_v40  ;;  %532 = vmatpush.bf16.msra.mxu0 %v1039_v32  ;;  %v1099_v47 = vor.u32 %v1126_v44, %v1096_v45  ;;  %v1125_v49 = vld [vmem:[%s1309_s11 + $0x54] sm:$0xf]  ;;  %546 = vmatpush.bf16.msra.mxu1 %v1043_v33  ;;  %v1087_v51 = vor.u32 %v1129_v48, %v1086_v46  ;;  %v1062_v52 = vld [vmem:[%s1309_s11 + $0x18] sm:$0xf]  ;;  %v1118_v54 = vld [vmem:[%s1309_s11 + $0x1c] sm:$0xf] }
  0x32   : > { %v1088_v50 = vld [vmem:[%s1309_s11 + $0x70] sm:$0xf0]  ;;  %560 = vmatpush.bf16.msra.mxu2 %v1047_v38  ;;  %v1122_v53 = vld [vmem:[%s1309_s11 + $0x34] sm:$0xf0]  ;;  %v1064_v57 = vld [vmem:[%s1309_s11 + $0x38] sm:$0xf0] }
  0x33   : > { %574 = vmatpush.bf16.msra.mxu3 %v1051_v42  ;;  %v1091_v55 = vor.u32 %v1125_v49, %v1088_v50  ;;  %v1063_v56 = vor.u32 %v1122_v53, %v1062_v52  ;;  %v1054_v58 = vld [vmem:[%s1309_s11 + $0x10] sm:$0xf]  ;;  %v1067_v60 = vor.u32 %v1118_v54, %v1064_v57  ;;  %v1117_v61 = vld [vmem:[%s1309_s11 + $0x14] sm:$0xf]  ;;  %v1358_v7 = vld [vmem:[%s378_s17] sm:$0xff]  ;;  %s1112_s28 = sshll.u32 %s1431_s27, 4 }
  0x34   : > { %v1121_v59 = vld [vmem:[%s1309_s11 + $0x2c] sm:$0xf0]  ;;  %1100 = vmatmul.msk.bf16.vlgmr.msra.gmra.mxu0 %vm521_vm0, %v1114_v37  ;;  %v1056_v62 = vld [vmem:[%s1309_s11 + $0x30] sm:$0xf0]  ;;  %1101 = vmatmul.msk.bf16.vlgmr.msra.gmra.mxu1 %vm521_vm0, %v1114_v37  ;;  %v641_v8 = vperm.slane %v1358_v7, 2  ;;  %v642_v9 = vperm.slane %v1358_v7, 3  ;;  %s1439_s6 = scalar_lea.vmem %s1548_s4, %s1112_s28  ;;  %s1510_s9 = scalar_lea.vmem %s1549_s5, %s1112_s28 }
  0x35   : > { %1102 = vmatmul.msk.bf16.vlgmr.msra.gmra.mxu2 %vm521_vm0, %v1114_v37  ;;  %587 = vmatpush.bf16.msrb.mxu0 %v1087_v51  ;;  %v1055_v63 = vor.u32 %v1121_v59, %v1054_v58  ;;  %v1059_v0 = vor.u32 %v1117_v61, %v1056_v62  ;;  %v639_v10 = vperm.slane %v1358_v7, 0  ;;  %v643_v11 = vperm.slane %v1358_v7, 4  ;;  %v1367_v12 = vld [vmem:[%s385_s25] sm:$0xff] }
  0x36   : > { %615 = vmatpush.bf16.msrb.mxu2 %v1095_v43  ;;  %1103 = vmatmul.msk.bf16.vlgmr.msra.gmra.mxu3 %vm521_vm0, %v1114_v37  ;;  %v640_v13 = vperm.slane %v1358_v7, 1  ;;  %v644_v15 = vperm.slane %v1358_v7, 5  ;;  %v675_v17 = vperm.slane %v1367_v12, 2  ;;  %v676_v21 = vperm.slane %v1367_v12, 3 }
  0x37   : > { %629 = vmatpush.bf16.msrb.mxu3 %v1099_v47  ;;  %601 = vmatpush.bf16.msrb.mxu1 %v1091_v55  ;;  %v673_v24 = vperm.slane %v1367_v12, 0  ;;  %v677_v26 = vperm.slane %v1367_v12, 4  ;;  %v674_v28 = vperm.slane %v1367_v12, 1  ;;  %v678_v30 = vperm.slane %v1367_v12, 5 }
  0x38   : > { %v645_v32 = vperm.slane %v1358_v7, 6  ;;  %v646_v34 = vperm.slane %v1358_v7, 7  ;;  %v680_v41 = vperm.slane %v1367_v12, 7  ;;  %vm413_vm1 = vcmask 7168  }
  0x39   : > { %588 = vmatpush.bf16.msrb.mxu0 %v1055_v63 }
  0x3a   : > { %616 = vmatpush.bf16.msrb.mxu2 %v1063_v56 }
  0x3b   : > { %630 = vmatpush.bf16.msrb.mxu3 %v1067_v60  ;;  %602 = vmatpush.bf16.msrb.mxu1 %v1059_v0 }
  0x44   : > { %1104 = vmatmul.msk.bf16.vlgmr.msrb.gmra.mxu0 %vm521_vm0, %v1114_v37  ;;  %1105 = vmatmul.msk.bf16.vlgmr.msrb.gmra.mxu1 %vm521_vm0, %v1114_v37 }
  0x45   : > { %1106 = vmatmul.msk.bf16.vlgmr.msrb.gmra.mxu2 %vm521_vm0, %v1114_v37 }
  0x46   : > { %1107 = vmatmul.msk.bf16.vlgmr.msrb.gmra.mxu3 %vm521_vm0, %v1114_v37  ;;  %v679_v37 = vperm.slane %v1367_v12, 6 }
  0xb1   : > { %v534_v1 = vpop.f32.mrf.mxu0  ;;  %v548_v2 = vpop.f32.mrf.mxu1 }
  0xb2   : > { %v655_v23 = vmul.f32 %v639_v10, %v534_v1  ;;  %v656_v27 = vmul.f32 %v640_v13, %v548_v2 }
  0xb4   : > { %v1383_v35 = vadd.f32 %v673_v24, %v655_v23  ;;  %v1388_v38 = vadd.f32 %v674_v28, %v656_v27 }
  0xb8   : > { %v562_v3 = vpop.f32.mrf.mxu2 }
  0xb9   : > { %v576_v4 = vpop.f32.mrf.mxu3  ;;  %v536_v5 = vpop.f32.mrf.mxu0  ;;  %v657_v16 = vmul.f32 %v641_v8, %v562_v3 }
  0xba   : > { %v550_v6 = vpop.f32.mrf.mxu1  ;;  %v658_v20 = vmul.f32 %v642_v9, %v576_v4  ;;  %v663_v51 = vmul.f32 %v639_v10, %v536_v5 }
  0xbb   : > { %v1377_v31 = vadd.f32 %v675_v17, %v657_v16  ;;  %v664_v55 = vmul.f32 %v640_v13, %v550_v6 }
  0xbc   : > { %v1380_v33 = vadd.f32 %v676_v21, %v658_v20  ;;  %v1409_v63 = vadd.f32 %v673_v24, %v663_v51 }
  0xbd   : > { %v705_v42 = vmax.f32 %v1383_v35, %v1377_v31  ;;  %v1413_v1 = vadd.f32 %v674_v28, %v664_v55 }
  0xbe   : > { %v706_v47 = vmax.f32 %v1388_v38, %v1380_v33 }
  0xc0   : > { %v564_v14 = vpop.f32.mrf.mxu2 }
  0xc1   : > { %v578_v18 = vpop.f32.mrf.mxu3  ;;  %v590_v19 = vpop.f32.mrf.mxu0  ;;  %v665_v43 = vmul.f32 %v641_v8, %v564_v14 }
  0xc2   : > { %v604_v22 = vpop.f32.mrf.mxu1  ;;  %v659_v25 = vmul.f32 %v643_v11, %v590_v19  ;;  %v666_v48 = vmul.f32 %v642_v9, %v578_v18  ;;  %v723_v18 = vlaneseq }
  0xc3   : > { %v660_v29 = vmul.f32 %v644_v15, %v604_v22  ;;  %v1403_v59 = vadd.f32 %v675_v17, %v665_v43  ;;  %v1213_v17 = vmov -inf  }
  0xc4   : > { %v1385_v36 = vadd.f32 %v677_v26, %v659_v25  ;;  %v1406_v61 = vadd.f32 %v676_v21, %v666_v48  ;;  %414 = vst.msk [vmem:[%s1439_s6] sm:$0xff] %vm413_vm1, %v1213_v17  ;;  %v724_v19 = vand.u32 127, %v723_v18 }
  0xc5   : > { %v1390_v39 = vadd.f32 %v678_v30, %v660_v29  ;;  %v714_v5 = vmax.f32 %v1409_v63, %v1403_v59  ;;  %415 = vst.msk [vmem:[%s1439_s6 + $0x8] sm:$0xff] %vm413_vm1, %v1213_v17 }
  0xc6   : > { %v707_v54 = vmax.f32 %v705_v42, %v1385_v36  ;;  %v715_v8 = vmax.f32 %v1413_v1, %v1406_v61  ;;  %v725_v20 = vadd.s32 128, %v724_v19  ;;  %v726_v21 = vadd.s32 256, %v724_v19 }
  0xc7   : > { %v708_v58 = vmax.f32 %v706_v47, %v1390_v39  ;;  %v727_v23 = vadd.s32 384, %v724_v19  ;;  %v728_v24 = vadd.s32 512, %v724_v19  ;;  %v730_v27 = vadd.s32 768, %v724_v19 }
  0xc8   : > { %v618_v40 = vpop.f32.mrf.mxu2 }
  0xc9   : > { %v661_v44 = vmul.f32 %v645_v32, %v618_v40  ;;  %v632_v45 = vpop.f32.mrf.mxu3  ;;  %v592_v46 = vpop.f32.mrf.mxu0 }
  0xca   : > { %v662_v49 = vmul.f32 %v646_v34, %v632_v45  ;;  %v606_v50 = vpop.f32.mrf.mxu1  ;;  %v667_v53 = vmul.f32 %v643_v11, %v592_v46 }
  0xcb   : > { %v1397_v52 = vadd.f32 %v679_v37, %v661_v44  ;;  %v668_v57 = vmul.f32 %v644_v15, %v606_v50  ;;  %v1448_v25 = vld [vmem:[%s1439_s6] sm:$0xff] }
  0xcc   : > { %v1400_v56 = vadd.f32 %v680_v41, %v662_v49  ;;  %v1411_v0 = vadd.f32 %v677_v26, %v667_v53  ;;  %v729_v26 = vadd.s32 640, %v724_v19  ;;  %v1492_v51 = vld [vmem:[%s1439_s6 + $0x8] sm:$0xff] }
  0xcd   : > { %v709_v60 = vmax.f32 %v707_v54, %v1397_v52  ;;  %v1415_v2 = vadd.f32 %v678_v30, %v668_v57 }
  0xce   : > { %v710_v62 = vmax.f32 %v708_v58, %v1400_v56  ;;  %v716_v10 = vmax.f32 %v714_v5, %v1411_v0 }
  0xcf   : > { %v717_v12 = vmax.f32 %v715_v8, %v1415_v2 }
  0xd0   : > { %v620_v3 = vpop.f32.mrf.mxu2  ;;  %v711_v4 = vmax.f32 %v709_v60, %v710_v62 }
  0xd1   : > { %v669_v6 = vmul.f32 %v645_v32, %v620_v3  ;;  %v634_v7 = vpop.f32.mrf.mxu3  ;;  %v731_v32 = vadd.s32 896, %v724_v19  ;;  %v1214_v3 = vmov 0  }
  0xd2   : > { %v670_v9 = vmul.f32 %v646_v34, %v634_v7  ;;  %712 = vmax.xlane.f32.xlu0 %v711_v4  ;;  %416 = vst.msk [vmem:[%s1510_s9] sm:$0xff] %vm413_vm1, %v1214_v3 }
  0xd3   : > { %v1422_v11 = vadd.f32 %v679_v37, %v669_v6  ;;  %417 = vst.msk [vmem:[%s1510_s9 + $0x8] sm:$0xff] %vm413_vm1, %v1214_v3 }
  0xd4   : > { %v1425_v13 = vadd.f32 %v680_v41, %v670_v9 }
  0xd5   : > { %v718_v14 = vmax.f32 %v716_v10, %v1422_v11 }
  0xd6   : > { %v719_v15 = vmax.f32 %v717_v12, %v1425_v13 }
  0xd8   : > { %v720_v16 = vmax.f32 %v718_v14, %v719_v15 }
  0xd9   : > { %v829_v18 = vld [vmem:[%s1510_s9] sm:$0xff] }
  0xda   : > { %721 = vmax.xlane.f32.xlu0 %v720_v16  ;;  %v822_v16 = vstv %s1108_s10 }
 0x145   : > { %v1445_v22 = vpop.xlane.xlu0 %712 }
 0x146   : > { %vm732_vm2 = vcmp.eq.f32.partialorder %v1383_v35, %v1445_v22  ;;  %vm733_vm3 = vcmp.eq.f32.partialorder %v1388_v38, %v1445_v22  ;;  %vm734_vm4 = vcmp.eq.f32.partialorder %v1377_v31, %v1445_v22  ;;  %vm735_vm5 = vcmp.eq.f32.partialorder %v1380_v33, %v1445_v22 }
 0x147   : > { %vm736_vm6 = vcmp.eq.f32.partialorder %v1385_v36, %v1445_v22  ;;  %vm737_vm7 = vcmp.eq.f32.partialorder %v1390_v39, %v1445_v22  ;;  %v748_v28 = vsel %vm732_vm2, %v724_v19, 2147483647  ;;  %v749_v29 = vsel %vm733_vm3, %v725_v20, 2147483647 }
 0x148   : > { %v750_v30 = vsel %vm734_vm4, %v726_v21, 2147483647  ;;  %vm827_vm8 = vcmp.gt.f32.partialorder %v1445_v22, %v1448_v25  ;;  %vm738_vm9 = vcmp.eq.f32.partialorder %v1397_v52, %v1445_v22  ;;  %v751_v31 = vsel %vm735_vm5, %v727_v23, 2147483647 }
 0x149   : > { %vm764_vm10 = vcmp.lt.s32.totalorder %v748_v28, %v750_v30  ;;  %vm739_vm11 = vcmp.eq.f32.partialorder %v1400_v56, %v1445_v22  ;;  %v752_v33 = vsel %vm736_vm6, %v728_v24, 2147483647  ;;  %vm766_vm12 = vcmp.lt.s32.totalorder %v749_v29, %v751_v31 }
 0x14a   : > { %v765_v34 = vsel %vm764_vm10, %v748_v28, %v750_v30  ;;  %v753_v35 = vsel %vm737_vm7, %v729_v26, 2147483647  ;;  %v767_v36 = vsel %vm766_vm12, %v749_v29, %v751_v31  ;;  %v838_v37 = vsel %vm827_vm8, %v1445_v22, %v1448_v25  ;;  %v830_v28 = vld [vmem:[%s1510_s9 + $0x8] sm:$0xff] }
 0x14b   : > { %vm768_vm13 = vcmp.lt.s32.totalorder %v765_v34, %v752_v33  ;;  %v754_v38 = vsel %vm738_vm9, %v730_v27, 2147483647  ;;  %vm770_vm14 = vcmp.lt.s32.totalorder %v767_v36, %v753_v35  ;;  %840 = vst.msk [vmem:[%s1439_s6] sm:$0xff] %vm413_vm1, %v838_v37  ;;  %v755_v41 = vsel %vm739_vm11, %v731_v32, 2147483647 }
 0x14c   : > { %v769_v39 = vsel %vm768_vm13, %v765_v34, %v752_v33  ;;  %v771_v42 = vsel %vm770_vm14, %v767_v36, %v753_v35 }
 0x14d   : > { %v1475_v40 = vpop.xlane.xlu0 %721  ;;  %vm772_vm15 = vcmp.lt.s32.totalorder %v769_v39, %v754_v38  ;;  %vm774_vm0 = vcmp.lt.s32.totalorder %v771_v42, %v755_v41 }
 0x14e   : > { %v773_v43 = vsel %vm772_vm15, %v769_v39, %v754_v38  ;;  %vm740_vm2 = vcmp.eq.f32.partialorder %v1409_v63, %v1475_v40  ;;  %vm741_vm3 = vcmp.eq.f32.partialorder %v1413_v1, %v1475_v40  ;;  %v775_v44 = vsel %vm774_vm0, %v771_v42, %v755_v41 }
 0x14f   : > { %vm742_vm4 = vcmp.eq.f32.partialorder %v1403_v59, %v1475_v40  ;;  %vm743_vm5 = vcmp.eq.f32.partialorder %v1406_v61, %v1475_v40  ;;  %vm776_vm6 = vcmp.lt.s32.totalorder %v773_v43, %v775_v44  ;;  %vm744_vm7 = vcmp.eq.f32.partialorder %v1411_v0, %v1475_v40 }
 0x150   : > { %vm745_vm9 = vcmp.eq.f32.partialorder %v1415_v2, %v1475_v40  ;;  %v777_v45 = vsel %vm776_vm6, %v773_v43, %v775_v44  ;;  %v756_v46 = vsel %vm740_vm2, %v724_v19, 2147483647  ;;  %v757_v47 = vsel %vm741_vm3, %v725_v20, 2147483647 }
 0x151   : > { %v758_v48 = vsel %vm742_vm4, %v726_v21, 2147483647  ;;  %v779_v49 = vshra.s32 %v777_v45, 16  ;;  %vm746_vm10 = vcmp.eq.f32.partialorder %v1422_v11, %v1475_v40  ;;  %v759_v50 = vsel %vm743_vm5, %v727_v23, 2147483647 }
 0x152   : > { %vm792_vm11 = vcmp.lt.s32.totalorder %v756_v46, %v758_v48  ;;  %vm747_vm12 = vcmp.eq.f32.partialorder %v1425_v13, %v1475_v40  ;;  %v760_v52 = vsel %vm744_vm7, %v728_v24, 2147483647  ;;  %v761_v55 = vsel %vm745_vm9, %v729_v26, 2147483647 }
 0x153   : > { %v793_v53 = vsel %vm792_vm11, %v756_v46, %v758_v48  ;;  %v781_v54 = vcvt.s32.f32 %v779_v49  ;;  %vm794_vm13 = vcmp.lt.s32.totalorder %v757_v47, %v759_v50  ;;  %v762_v56 = vsel %vm746_vm10, %v730_v27, 2147483647 }
 0x154   : > { %vm796_vm14 = vcmp.lt.s32.totalorder %v793_v53, %v760_v52  ;;  %v795_v57 = vsel %vm794_vm13, %v757_v47, %v759_v50  ;;  %vm828_vm15 = vcmp.gt.f32.partialorder %v1475_v40, %v1492_v51  ;;  %v763_v60 = vsel %vm747_vm12, %v731_v32, 2147483647 }
 0x155   : > { %v797_v58 = vsel %vm796_vm14, %v793_v53, %v760_v52  ;;  %782 = vmin.xlane.f32.xlu1 %v781_v54  ;;  %vm798_vm0 = vcmp.lt.s32.totalorder %v795_v57, %v761_v55  ;;  %v839_v59 = vsel %vm828_vm15, %v1475_v40, %v1492_v51  ;;  %v778_v4 = vand.u32 65535, %v777_v45 }
 0x156   : > { %vm800_vm2 = vcmp.lt.s32.totalorder %v797_v58, %v762_v56  ;;  %v799_v61 = vsel %vm798_vm0, %v795_v57, %v761_v55  ;;  %841 = vst.msk [vmem:[%s1439_s6 + $0x8] sm:$0xff] %vm413_vm1, %v839_v59 }
 0x157   : > { %v801_v62 = vsel %vm800_vm2, %v797_v58, %v762_v56  ;;  %vm802_vm3 = vcmp.lt.s32.totalorder %v799_v61, %v763_v60  ;;  %v780_v6 = vcvt.s32.f32 %v778_v4 }
 0x158   : > { %v803_v63 = vsel %vm802_vm3, %v799_v61, %v763_v60 }
 0x159   : > { %vm804_vm4 = vcmp.lt.s32.totalorder %v801_v62, %v803_v63 }
 0x15a   : > { %v805_v0 = vsel %vm804_vm4, %v801_v62, %v803_v63 }
 0x15b   : > { %v807_v1 = vshra.s32 %v805_v0, 16  ;;  %v806_v8 = vand.u32 65535, %v805_v0 }
 0x15d   : > { %v809_v2 = vcvt.s32.f32 %v807_v1  ;;  %v808_v10 = vcvt.s32.f32 %v806_v8 }
 0x15f   : > { %810 = vmin.xlane.f32.xlu1 %v809_v2 }
 0x1c8   : > { %v783_v5 = vpop.xlane.xlu1 %782 }
 0x1c9   : > { %vm784_vm5 = vcmp.eq.f32.partialorder %v781_v54, %v783_v5  ;;  %v789_v12 = vcvt.f32.s32 %v783_v5 }
 0x1ca   : > { %v785_v7 = vsel %vm784_vm5, %v780_v6, inf }
 0x1cb   : > { %786 = vmin.xlane.f32.xlu2 %v785_v7  ;;  %v790_v14 = vshll.u32 %v789_v12, 16 }
 0x1d2   : > { %v811_v9 = vpop.xlane.xlu1 %810 }
 0x1d3   : > { %vm812_vm6 = vcmp.eq.f32.partialorder %v809_v2, %v811_v9  ;;  %v817_v20 = vcvt.f32.s32 %v811_v9 }
 0x1d4   : > { %v813_v11 = vsel %vm812_vm6, %v808_v10, inf }
 0x1d5   : > { %814 = vmin.xlane.f32.xlu2 %v813_v11  ;;  %v818_v24 = vshll.u32 %v817_v20, 16 }
 0x23e   : > { %v787_v13 = vpop.xlane.xlu2 %786 }
 0x23f   : > { %v788_v15 = vcvt.f32.s32 %v787_v13 }
 0x241   : > { %v791_v17 = vadd.s32 %v790_v14, %v788_v15 }
 0x243   : > { %v823_v19 = vadd.s32 %v822_v16, %v791_v17 }
 0x245   : > { %v831_v21 = vsel %vm827_vm8, %v823_v19, %v829_v18 }
 0x246   : > { %834 = vst.msk [vmem:[%s1510_s9] sm:$0xff] %vm413_vm1, %v831_v21 }
 0x248   : > { %v815_v23 = vpop.xlane.xlu2 %814 }
 0x249   : > { %v816_v26 = vcvt.f32.s32 %v815_v23 }
 0x24b   : > { %v819_v27 = vadd.s32 %v818_v24, %v816_v26 }
 0x24d   : > { %v824_v29 = vadd.s32 %v822_v16, %v819_v27 }
 0x24f   : > { %v832_v30 = vsel %vm828_vm15, %v824_v29, %v830_v28 }
 0x250   : > { %835 = vst.msk [vmem:[%s1510_s9 + $0x8] sm:$0xff] %vm413_vm1, %v832_v30 }
 0x251 PF: > { %s16_s22 = sadd.s32 1, %s1211_s22   ;;  %s1550_s18 = smov %s1199_s19 }
 0x252   : > { %p13_p11 = scmp.ge.s32.totalorder %s16_s22, 4   ;;  %s1551_s19 = smov %s1280_s26 }
 0x253   : > { %s1552_s20 = smov %s1207_s21  ;;  %s1553_s21 = smov %s1555_s23 }
 0x254   :  { %15 = sbr.rel (!%p13_p11) target bundleno = 3 (0x3), region = 119 }

</bundles_post_ra>
